<compile_context>
chip_gen: v6e
topology: v6e:2x2x1
jax: 0.10.0
libtpu: 0.0.40
codegen_flags: <defaults>
</compile_context>

<pallas_src>
import functools

import jax
import jax.numpy as jnp
from jax.experimental import pallas as pl
from jax.experimental.pallas import tpu as pltpu


LANE = 128  # node and feature dims padded to lane width


def _round_up(x, m):
    return (x + m - 1) // m * m


def gcn_fused_kernel(a_ref, x_ref, w_ref, b_ref, o_ref, *, num_layers):
    """All GCNConv+ReLU layers fused in one grid-less invocation.

    a_ref : [Np, Np]       bf16  normalized adjacency (resident in VMEM)
    x_ref : [Np, Fp]       bf16  padded input features
    w_ref : [L, Fp, Fp]    bf16  stacked (padded) layer weights
    b_ref : [L, 1, Fp]     f32   stacked (padded) layer biases
    o_ref : [Np, Fp]       f32   final output
    """
    a = a_ref[...]                      # bf16 [Np, Np]
    h = x_ref[...]                      # bf16 [Np, Fp] inter-layer state (bf16)
    out_f32 = None
    for l in range(num_layers):         # static unroll (num_layers is trace-time)
        # Aggregate over the graph: [Np, Np] @ [Np, Fp] -> f32 acc on MXU.
        agg = jnp.dot(a, h, preferred_element_type=jnp.float32)
        # Feature transform: [Np, Fp] @ [Fp, Fp] -> f32 acc on MXU.
        out = jnp.dot(agg.astype(jnp.bfloat16), w_ref[l],
                      preferred_element_type=jnp.float32)
        # Bias + ReLU in f32, then keep the resident state in bf16.
        out_f32 = jnp.maximum(out + b_ref[l], 0.0)
        h = out_f32.astype(jnp.bfloat16)
    o_ref[...] = out_f32


def gcn_forward_pallas(x, edge_index, params):
    """Full GCN forward: relu(A_hat @ (x @ W_i) + b_i) for every layer i."""
    n, f_in = x.shape
    num_layers = len(params)
    f_out = params[-1][0].shape[1]

    n_pad = _round_up(max(n, LANE), LANE)
    f_pad = _round_up(max(f_in, max(w.shape[1] for w, _ in params), LANE), LANE)

    # --- glue (plain JAX): dense normalized adjacency + padding / packing ---
    a_hat = build_normalized_adjacency(edge_index, n)                  # [n, n] f32
    a_hat_p = jnp.zeros((n_pad, n_pad), jnp.float32).at[:n, :n].set(a_hat)
    a_hat_p = a_hat_p.astype(jnp.bfloat16)

    x_p = jnp.zeros((n_pad, f_pad), jnp.float32).at[:n, :f_in].set(x)
    x_p = x_p.astype(jnp.bfloat16)

    w_stack = jnp.zeros((num_layers, f_pad, f_pad), jnp.float32)
    b_stack = jnp.zeros((num_layers, 1, f_pad), jnp.float32)
    for i, (w, b) in enumerate(params):
        fi, fo = w.shape
        w_stack = w_stack.at[i, :fi, :fo].set(w)
        b_stack = b_stack.at[i, :, :fo].set(b.reshape(1, -1))
    w_stack = w_stack.astype(jnp.bfloat16)

    # --- advisory cost hint for the XLA scheduler ---
    flops = num_layers * (2 * n_pad * n_pad * f_pad + 2 * n_pad * f_pad * f_pad)
    bytes_accessed = (a_hat_p.size * 2 + x_p.size * 2 + w_stack.size * 2
                      + b_stack.size * 4 + n_pad * f_pad * 4)
    cost = pl.CostEstimate(flops=flops, transcendentals=0,
                           bytes_accessed=bytes_accessed)

    out_p = pl.pallas_call(
        functools.partial(gcn_fused_kernel, num_layers=num_layers),
        out_shape=jax.ShapeDtypeStruct((n_pad, f_pad), jnp.float32),
        cost_estimate=cost,
    )(a_hat_p, x_p, w_stack, b_stack)

    return out_p[:n, :f_out]


def build_normalized_adjacency(edge_index, num_nodes):
    """Dense A_hat = D^{-1/2} (A + I_remaining) D^{-1/2}  (glue, plain JAX).

    Matches PyG's add_remaining_self_loops: a weight-1 self-loop is added only
    for nodes that do not already have one.
    """
    row, col = edge_index[0], edge_index[1]
    adj = jnp.zeros((num_nodes, num_nodes), jnp.float32)
    adj = adj.at[row, col].add(1.0)
    diag = jnp.diagonal(adj)
    adj = adj + jnp.diag(jnp.where(diag > 0, 0.0, 1.0))
    deg = jnp.sum(adj, axis=1)
    dinv = jnp.where(deg > 0, jax.lax.rsqrt(deg), 0.0)
    return adj * dinv[:, None] * dinv[None, :]


def init_gcn_params(key, input_dim, num_hidden, num_layers):
    """Glorot-uniform weights + zero biases (same shapes as GCNConv)."""
    params = []
    dims = [input_dim] + [num_hidden] * num_layers
    for i in range(num_layers):
        key, sub = jax.random.split(key)
        f_in, f_out = dims[i], dims[i + 1]
        limit = jnp.sqrt(6.0 / (f_in + f_out))
        w = jax.random.uniform(sub, (f_in, f_out), jnp.float32, -limit, limit)
        b = jnp.zeros((1, f_out), jnp.float32)
        params.append((w, b))
    return params


if __name__ == "__main__":
    # Small config consistent with the module: 2 layers, input_dim=8, hidden=32.
    NUM_NODES, INPUT_DIM, NUM_HIDDEN, NUM_LAYERS = 16, 8, 32, 2

    key = jax.random.PRNGKey(0)
    kx, kp = jax.random.split(key)

    # Node features [N, F_in].
    x = jax.random.normal(kx, (NUM_NODES, INPUT_DIM), jnp.float32)

    # Deterministic undirected ring graph as edge_index [2, E].
    src = jnp.arange(NUM_NODES, dtype=jnp.int32)
    dst = (src + 1) % NUM_NODES
    edge_index = jnp.stack(
        [jnp.concatenate([src, dst]), jnp.concatenate([dst, src])], axis=0)

    params = init_gcn_params(kp, INPUT_DIM, NUM_HIDDEN, NUM_LAYERS)

    fwd = jax.jit(functools.partial(gcn_forward_pallas, params=params))
    out = fwd(x, edge_index)
    jax.block_until_ready(out)

    # Pure-JAX f32 reference of the module semantics; tolerance loosened
    # because the kernel does its matmuls in bf16 (f32 accumulation).
    a_hat = build_normalized_adjacency(edge_index, NUM_NODES)
    ref = x
    for w, b in params:
        ref = jnp.maximum(a_hat @ (ref @ w) + b, 0.0)

    assert out.shape == (NUM_NODES, NUM_HIDDEN)
    assert jnp.allclose(out, ref, atol=2e-2, rtol=2e-2), (
        float(jnp.max(jnp.abs(out - ref))))

    print("KERNEL_OK")
</pallas_src>

<mosaic_0001>
module attributes {stable_mosaic.version = 11 : i64} {
  func.func private @main(%arg0: i32) attributes {dimension_semantics = [#tpu.dimension_semantics<core_parallel>], iteration_bounds = array<i64: 2>, tpu.core_type = #tpu.core_type<sc_scalar_subcore>, window_params = []} {
    return
  }
}

module attributes {stable_mosaic.version = 11 : i64} {
  func.func private @main(%arg0: i32) attributes {dimension_semantics = [#tpu.dimension_semantics<core_parallel>], iteration_bounds = array<i64: 2>, tpu.core_type = #tpu.core_type<sc_scalar_subcore>, window_params = []} {
    return
  }
}

module attributes {stable_mosaic.version = 11 : i64} {
  func.func @gcn_fused_kernel(%arg0: memref<128x128xbf16, #tpu.memory_space<vmem>>, %arg1: memref<128x128xbf16, #tpu.memory_space<vmem>>, %arg2: memref<2x128x128xbf16, #tpu.memory_space<vmem>>, %arg3: memref<2x1x128xf32, #tpu.memory_space<vmem>>, %arg4: memref<128x128xf32, #tpu.memory_space<vmem>>) attributes {dimension_semantics = [], scalar_prefetch = 0 : i64, scratch_operands = 0 : i64, tpu.core_type = #tpu.core_type<tc>} {
    %c0 = arith.constant 0 : index
    %c0_0 = arith.constant 0 : index
    %0 = vector.load %arg0[%c0, %c0_0] : memref<128x128xbf16, #tpu.memory_space<vmem>>, vector<128x128xbf16>
    %c0_1 = arith.constant 0 : index
    %c0_2 = arith.constant 0 : index
    %1 = vector.load %arg1[%c0_1, %c0_2] : memref<128x128xbf16, #tpu.memory_space<vmem>>, vector<128x128xbf16>
    %cst = arith.constant dense<0.000000e+00> : vector<128x128xf32>
    %2 = tpu.matmul %0, %1, %cst {dimension_numbers = #tpu.dot_dimension_numbers<[1], [0], [0], [1], [0, 0, 1, 1], [], []>} : vector<128x128xbf16>, vector<128x128xbf16>, vector<128x128xf32> -> vector<128x128xf32>
    %3 = arith.truncf %2 : vector<128x128xf32> to vector<128x128xbf16>
    %c0_3 = arith.constant 0 : index
    %c0_4 = arith.constant 0 : index
    %c0_5 = arith.constant 0 : index
    %4 = vector.load %arg2[%c0_3, %c0_4, %c0_5] : memref<2x128x128xbf16, #tpu.memory_space<vmem>>, vector<1x128x128xbf16>
    %5 = vector.shape_cast %4 : vector<1x128x128xbf16> to vector<128x128xbf16>
    %cst_6 = arith.constant dense<0.000000e+00> : vector<128x128xf32>
    %6 = tpu.matmul %3, %5, %cst_6 {dimension_numbers = #tpu.dot_dimension_numbers<[1], [0], [0], [1], [0, 0, 1, 1], [], []>} : vector<128x128xbf16>, vector<128x128xbf16>, vector<128x128xf32> -> vector<128x128xf32>
    %c0_7 = arith.constant 0 : index
    %c0_8 = arith.constant 0 : index
    %c0_9 = arith.constant 0 : index
    %7 = vector.load %arg3[%c0_7, %c0_8, %c0_9] : memref<2x1x128xf32, #tpu.memory_space<vmem>>, vector<1x1x128xf32>
    %8 = vector.shape_cast %7 : vector<1x1x128xf32> to vector<1x128xf32>
    %9 = vector.broadcast %8 : vector<1x128xf32> to vector<128x128xf32>
    %10 = arith.addf %6, %9 : vector<128x128xf32>
    %cst_10 = arith.constant 0.000000e+00 : f32
    %11 = vector.broadcast %cst_10 : f32 to vector<128x128xf32>
    %12 = arith.maximumf %10, %11 : vector<128x128xf32>
    %13 = arith.truncf %12 : vector<128x128xf32> to vector<128x128xbf16>
    %cst_11 = arith.constant dense<0.000000e+00> : vector<128x128xf32>
    %14 = tpu.matmul %0, %13, %cst_11 {dimension_numbers = #tpu.dot_dimension_numbers<[1], [0], [0], [1], [0, 0, 1, 1], [], []>} : vector<128x128xbf16>, vector<128x128xbf16>, vector<128x128xf32> -> vector<128x128xf32>
    %15 = arith.truncf %14 : vector<128x128xf32> to vector<128x128xbf16>
    %c1 = arith.constant 1 : index
    %c0_12 = arith.constant 0 : index
    %c0_13 = arith.constant 0 : index
    %16 = vector.load %arg2[%c1, %c0_12, %c0_13] : memref<2x128x128xbf16, #tpu.memory_space<vmem>>, vector<1x128x128xbf16>
    %17 = vector.shape_cast %16 : vector<1x128x128xbf16> to vector<128x128xbf16>
    %cst_14 = arith.constant dense<0.000000e+00> : vector<128x128xf32>
    %18 = tpu.matmul %15, %17, %cst_14 {dimension_numbers = #tpu.dot_dimension_numbers<[1], [0], [0], [1], [0, 0, 1, 1], [], []>} : vector<128x128xbf16>, vector<128x128xbf16>, vector<128x128xf32> -> vector<128x128xf32>
    %c1_15 = arith.constant 1 : index
    %c0_16 = arith.constant 0 : index
    %c0_17 = arith.constant 0 : index
    %19 = vector.load %arg3[%c1_15, %c0_16, %c0_17] : memref<2x1x128xf32, #tpu.memory_space<vmem>>, vector<1x1x128xf32>
    %20 = vector.shape_cast %19 : vector<1x1x128xf32> to vector<1x128xf32>
    %21 = vector.broadcast %20 : vector<1x128xf32> to vector<128x128xf32>
    %22 = arith.addf %18, %21 : vector<128x128xf32>
    %cst_18 = arith.constant 0.000000e+00 : f32
    %23 = vector.broadcast %cst_18 : f32 to vector<128x128xf32>
    %24 = arith.maximumf %22, %23 : vector<128x128xf32>
    %c0_19 = arith.constant 0 : index
    %c0_20 = arith.constant 0 : index
    %25 = vector.load %arg4[%c0_19, %c0_20] : memref<128x128xf32, #tpu.memory_space<vmem>>, vector<128x128xf32>
    tpu.vector_store %arg4[%c0_19, %c0_20], %24 {strides = array<i32>} : memref<128x128xf32, #tpu.memory_space<vmem>>, vector<128x128xf32>,
    return
  }
}

</mosaic_0001>

<bundles_post_ra>
// kernel: gcn_forward_pallas.1
= control target key start
LH: loop header
LB: loop body
LE: loop exit
PB: predicated region body
PF: predicated region fallthrough
CT: control target
= control target key end

     0   :  { %s1232_s1 = inlined_call_operand.vmem [shape: bf16[128,128], index: 1, kind: input, shape index: {}]   ;;  %s1233_s0 = inlined_call_operand.vmem [shape: bf16[128,128], index: 0, kind: input, shape index: {}]   ;;  %s1234_s2 = inlined_call_operand.vmem [shape: bf16[2,128,128], index: 2, kind: input, shape index: {}]   ;;  %s1235_s3 = inlined_call_operand.vmem [shape: f32[2,1,128], index: 3, kind: input, shape index: {}]   ;;  %s1236_s4 = inlined_call_operand.vmem [shape: f32[128,128], index: 4, kind: output, shape index: {}]  }
   0x1   :  { %v997_v0 = vld [vmem:[%s1232_s1 + $0x38] sm:$0xff]   ;;  %v998_v1 = vld [vmem:[%s1232_s1 + $0x30] sm:$0xff]   ;;  %v999_v2 = vld [vmem:[%s1232_s1 + $0x28] sm:$0xff]  }
   0x2   :  { %869 = vmatprep.subr.bf16.mxu0 %v997_v0  ;;  %v1000_v3 = vld [vmem:[%s1232_s1 + $0x20] sm:$0xff]   ;;  %v1001_v5 = vld [vmem:[%s1232_s1 + $0x18] sm:$0xff]   ;;  %v1002_v6 = vld [vmem:[%s1232_s1 + $0x10] sm:$0xff]  }
   0x3   :  { %870 = vmatpush3.bf16.msra.mxu0 %v997_v0  ;;  %v1005_v4 = vld [vmem:[%s1233_s0] sm:$0xff]   ;;  %v1013_v7 = vld [vmem:[%s1234_s2 + $0x38] sm:$0xff]   ;;  %v1014_v8 = vld [vmem:[%s1234_s2 + $0x30] sm:$0xff]  }
   0x4   :  { %871 = vmatprep.subr.bf16.mxu0 %v998_v1  ;;  %885 = vmatprep.mubr.bf16.mxu0 %v1005_v4  ;;  %v1003_v9 = vld [vmem:[%s1232_s1 + $0x8] sm:$0xff]   ;;  %v1004_v11 = vld [vmem:[%s1232_s1] sm:$0xff]   ;;  %v1017_v13 = vld [vmem:[%s1234_s2 + $0x18] sm:$0xff]  }
   0x5   :  { %901 = vmatprep.subr.bf16.mxu1 %v1013_v7  ;;  %v1015_v10 = vld [vmem:[%s1234_s2 + $0x28] sm:$0xff]   ;;  %v1016_v12 = vld [vmem:[%s1234_s2 + $0x20] sm:$0xff]   ;;  %v1104_v15 = vld [vmem:[%s1233_s0 + $0x10] sm:$0xff]  }
   0x6   :  { %902 = vmatpush3.bf16.msra.mxu1 %v1013_v7  ;;  %v1099_v14 = vld [vmem:[%s1233_s0 + $0x8] sm:$0xff]   ;;  %v1018_v16 = vld [vmem:[%s1234_s2 + $0x10] sm:$0xff]   ;;  %v1114_v17 = vld [vmem:[%s1233_s0 + $0x18] sm:$0xff]  }
   0x7   :  { %872 = vmatpush3.bf16.msra.mxu0 %v998_v1  ;;  %903 = vmatprep.subr.bf16.mxu1 %v1014_v8  ;;  %v1119_v18 = vld [vmem:[%s1233_s0 + $0x20] sm:$0xff]   ;;  %v1126_v19 = vld [vmem:[%s1233_s0 + $0x28] sm:$0xff]   ;;  %v1131_v20 = vld [vmem:[%s1233_s0 + $0x30] sm:$0xff]  }
   0x8   :  { %873 = vmatprep.subr.bf16.mxu0 %v999_v2  ;;  %v1138_v21 = vld [vmem:[%s1233_s0 + $0x38] sm:$0xff]   ;;  %v1019_v22 = vld [vmem:[%s1234_s2 + $0x8] sm:$0xff]   ;;  %v1020_v23 = vld [vmem:[%s1234_s2] sm:$0xff]  }
   0x9   :  { %v1021_v48 = vld [vmem:[%s1234_s2 + $0x78] sm:$0xff]   ;;  %v1022_v49 = vld [vmem:[%s1234_s2 + $0x70] sm:$0xff]   ;;  %v1023_v50 = vld [vmem:[%s1234_s2 + $0x68] sm:$0xff]  }
   0xa   :  { %904 = vmatpush3.bf16.msra.mxu1 %v1014_v8  ;;  %v1024_v51 = vld [vmem:[%s1234_s2 + $0x60] sm:$0xff]   ;;  %v1025_v52 = vld [vmem:[%s1234_s2 + $0x58] sm:$0xff]   ;;  %v1026_v53 = vld [vmem:[%s1234_s2 + $0x50] sm:$0xff]  }
   0xb   :  { %874 = vmatpush3.bf16.msra.mxu0 %v999_v2  ;;  %905 = vmatprep.subr.bf16.mxu1 %v1015_v10 }
   0xc   :  { %875 = vmatprep.subr.bf16.mxu0 %v1000_v3 }
   0xe   :  { %906 = vmatpush3.bf16.msra.mxu1 %v1015_v10 }
   0xf   :  { %876 = vmatpush3.bf16.msra.mxu0 %v1000_v3  ;;  %907 = vmatprep.subr.bf16.mxu1 %v1016_v12  ;;  %v770_v3 = vld [vmem:[%s1235_s3] ss:$0 sm:$0xff] }
  0x10   :  { %877 = vmatprep.subr.bf16.mxu0 %v1001_v5 }
  0x12   :  { %908 = vmatpush3.bf16.msra.mxu1 %v1016_v12 }
  0x13   :  { %878 = vmatpush3.bf16.msra.mxu0 %v1001_v5  ;;  %909 = vmatprep.subr.bf16.mxu1 %v1017_v13 }
  0x14   :  { %879 = vmatprep.subr.bf16.mxu0 %v1002_v6 }
  0x16   :  { %910 = vmatpush3.bf16.msra.mxu1 %v1017_v13 }
  0x17   :  { %880 = vmatpush3.bf16.msra.mxu0 %v1002_v6  ;;  %911 = vmatprep.subr.bf16.mxu1 %v1018_v16 }
  0x18   :  { %881 = vmatprep.subr.bf16.mxu0 %v1003_v9 }
  0x1a   :  { %912 = vmatpush3.bf16.msra.mxu1 %v1018_v16 }
  0x1b   :  { %882 = vmatpush3.bf16.msra.mxu0 %v1003_v9  ;;  %913 = vmatprep.subr.bf16.mxu1 %v1019_v22 }
  0x1c   :  { %883 = vmatprep.subr.bf16.mxu0 %v1004_v11 }
  0x1e   :  { %914 = vmatpush3.bf16.msra.mxu1 %v1019_v22 }
  0x1f   :  { %884 = vmatpush3.bf16.msra.mxu0 %v1004_v11  ;;  %915 = vmatprep.subr.bf16.mxu1 %v1020_v23 }
  0x22   :  { %886 = vmatmul.mubr.bf16.vlgmr.msra.gmra.mxu0 %v1099_v14  ;;  %916 = vmatpush3.bf16.msra.mxu1 %v1020_v23 }
  0x23   :  { %889 = vmatprep.mubr.bf16.mxu0 %v1104_v15  ;;  %965 = vmatprep.subr.bf16.mxu1 %v1021_v48 }
  0x2a   :  { %890 = vmatmul.mubr.bf16.gmra.mxu0 %v1114_v17 }
  0x2b   :  { %893 = vmatprep.mubr.bf16.mxu0 %v1119_v18 }
  0x32   :  { %894 = vmatmul.mubr.bf16.gmra.mxu0 %v1126_v19 }
  0x33   :  { %897 = vmatprep.mubr.bf16.mxu0 %v1131_v20 }
  0x3a   :  { %898 = vmatmul.mubr.bf16.gmra.mxu0 %v1138_v21 }
  0x3b   :  { %949 = vmatprep.mubr.bf16.mxu0 %v1005_v4 }
  0xe2   :  { %v887_v24 = vpop.f32.mrf.mxu0 }
  0xe4   :  { %v180_v25 = vpop.f32.mrf.mxu0 }
  0xe6   :  { %v888_v26 = vpop.f32.mrf.mxu0 }
  0xe7   :  { %v244_v29 = vpack.c.bf16 %v888_v26, %v887_v24 }
  0xe8   :  { %v183_v27 = vpop.f32.mrf.mxu0 }
  0xe9   :  { %v243_v28 = vpack.c.bf16 %v183_v27, %v180_v25 }
  0xea   :  { %v891_v30 = vpop.f32.mrf.mxu0 }
  0xeb   :  { %917 = vmatprep.mubr.bf16.mxu1 %v243_v28 }
  0xec   :  { %v196_v31 = vpop.f32.mrf.mxu0  ;;  %918 = vmatmul.mubr.bf16.vlgmr.msra.gmra.mxu1 %v244_v29 }
  0xed   :  { %966 = vmatpush3.bf16.msra.mxu1 %v1021_v48 }
  0xee   :  { %v892_v32 = vpop.f32.mrf.mxu0  ;;  %967 = vmatprep.subr.bf16.mxu1 %v1022_v49 }
  0xef   :  { %v246_v35 = vpack.c.bf16 %v892_v32, %v891_v30 }
  0xf0   :  { %v199_v33 = vpop.f32.mrf.mxu0 }
  0xf1   :  { %v245_v34 = vpack.c.bf16 %v199_v33, %v196_v31  ;;  %968 = vmatpush3.bf16.msra.mxu1 %v1022_v49 }
  0xf2   :  { %v895_v36 = vpop.f32.mrf.mxu0  ;;  %969 = vmatprep.subr.bf16.mxu1 %v1023_v50 }
  0xf3   :  { %921 = vmatprep.mubr.bf16.mxu1 %v245_v34 }
  0xf4   :  { %v212_v37 = vpop.f32.mrf.mxu0  ;;  %922 = vmatmul.mubr.bf16.gmra.mxu1 %v246_v35 }
  0xf5   :  { %970 = vmatpush3.bf16.msra.mxu1 %v1023_v50 }
  0xf6   :  { %v896_v38 = vpop.f32.mrf.mxu0  ;;  %971 = vmatprep.subr.bf16.mxu1 %v1024_v51 }
  0xf7   :  { %v248_v41 = vpack.c.bf16 %v896_v38, %v895_v36 }
  0xf8   :  { %v215_v39 = vpop.f32.mrf.mxu0 }
  0xf9   :  { %v247_v40 = vpack.c.bf16 %v215_v39, %v212_v37  ;;  %972 = vmatpush3.bf16.msra.mxu1 %v1024_v51 }
  0xfa   :  { %v899_v42 = vpop.f32.mrf.mxu0  ;;  %973 = vmatprep.subr.bf16.mxu1 %v1025_v52 }
  0xfb   :  { %925 = vmatprep.mubr.bf16.mxu1 %v247_v40 }
  0xfc   :  { %v228_v43 = vpop.f32.mrf.mxu0  ;;  %926 = vmatmul.mubr.bf16.gmra.mxu1 %v248_v41 }
  0xfd   :  { %974 = vmatpush3.bf16.msra.mxu1 %v1025_v52 }
  0xfe   :  { %v900_v44 = vpop.f32.mrf.mxu0  ;;  %975 = vmatprep.subr.bf16.mxu1 %v1026_v53 }
  0xff   :  { %v250_v47 = vpack.c.bf16 %v900_v44, %v899_v42 }
 0x100   :  { %v231_v45 = vpop.f32.mrf.mxu0 }
 0x101   :  { %v249_v46 = vpack.c.bf16 %v231_v45, %v228_v43  ;;  %976 = vmatpush3.bf16.msra.mxu1 %v1026_v53 }
 0x103   :  { %929 = vmatprep.mubr.bf16.mxu1 %v249_v46 }
 0x104   :  { %930 = vmatmul.mubr.bf16.gmra.mxu1 %v250_v47 }
 0x1ac   :  { %v919_v54 = vpop.f32.mrf.mxu1 }
 0x1ad   :  { %v365_v43 = vadd.f32 %v919_v54, %v770_v3  ;;  %v1027_v54 = vld [vmem:[%s1234_s2 + $0x48] sm:$0xff]  }
 0x1ae   :  { %v356_v55 = vpop.f32.mrf.mxu1  ;;  %977 = vmatprep.subr.bf16.mxu1 %v1027_v54 }
 0x1af   :  { %v421_v48 = vmax.f32 %v365_v43, 0.0  ;;  %v357_v49 = vadd.f32 %v770_v3, %v356_v55  ;;  %978 = vmatpush3.bf16.msra.mxu1 %v1027_v54 }
 0x1b0   :  { %v920_v56 = vpop.f32.mrf.mxu1 }
 0x1b1   :  { %v368_v40 = vadd.f32 %v920_v56, %v770_v3  ;;  %v419_v52 = vmax.f32 %v357_v49, 0.0 }
 0x1b2   :  { %v359_v57 = vpop.f32.mrf.mxu1 }
 0x1b3   :  { %v422_v45 = vmax.f32 %v368_v40, 0.0  ;;  %v360_v46 = vadd.f32 %v770_v3, %v359_v57 }
 0x1b4   :  { %v923_v58 = vpop.f32.mrf.mxu1 }
 0x1b5   :  { %v381_v33 = vadd.f32 %v923_v58, %v770_v3  ;;  %v436_v50 = vpack.c.bf16 %v422_v45, %v421_v48  ;;  %v420_v51 = vmax.f32 %v360_v46, 0.0 }
 0x1b6   :  { %v372_v59 = vpop.f32.mrf.mxu1 }
 0x1b7   :  { %v425_v38 = vmax.f32 %v381_v33, 0.0  ;;  %v373_v39 = vadd.f32 %v770_v3, %v372_v59  ;;  %v435_v53 = vpack.c.bf16 %v420_v51, %v419_v52 }
 0x1b8   :  { %v924_v60 = vpop.f32.mrf.mxu1 }
 0x1b9   :  { %v384_v30 = vadd.f32 %v924_v60, %v770_v3  ;;  %v423_v44 = vmax.f32 %v373_v39, 0.0 }
 0x1ba   :  { %v375_v61 = vpop.f32.mrf.mxu1 }
 0x1bb   :  { %v426_v35 = vmax.f32 %v384_v30, 0.0  ;;  %v376_v36 = vadd.f32 %v770_v3, %v375_v61 }
 0x1bc   :  { %v927_v62 = vpop.f32.mrf.mxu1 }
 0x1bd   :  { %v397_v16 = vadd.f32 %v927_v62, %v770_v3  ;;  %v438_v41 = vpack.c.bf16 %v426_v35, %v425_v38  ;;  %v424_v42 = vmax.f32 %v376_v36, 0.0 }
 0x1be   :  { %v388_v63 = vpop.f32.mrf.mxu1 }
 0x1bf   :  { %v429_v28 = vmax.f32 %v397_v16, 0.0  ;;  %v389_v29 = vadd.f32 %v770_v3, %v388_v63  ;;  %v437_v47 = vpack.c.bf16 %v424_v42, %v423_v44 }
 0x1c0   :  { %v928_v0 = vpop.f32.mrf.mxu1 }
 0x1c1   :  { %v400_v10 = vadd.f32 %v928_v0, %v770_v3  ;;  %v427_v34 = vmax.f32 %v389_v29, 0.0 }
 0x1c2   :  { %v391_v1 = vpop.f32.mrf.mxu1 }
 0x1c3   :  { %v430_v25 = vmax.f32 %v400_v10, 0.0  ;;  %v392_v26 = vadd.f32 %v770_v3, %v391_v1 }
 0x1c4   :  { %v931_v2 = vpop.f32.mrf.mxu1 }
 0x1c5   :  { %v413_v5 = vadd.f32 %v931_v2, %v770_v3  ;;  %v440_v31 = vpack.c.bf16 %v430_v25, %v429_v28  ;;  %v428_v32 = vmax.f32 %v392_v26, 0.0 }
 0x1c6   :  { %v404_v4 = vpop.f32.mrf.mxu1 }
 0x1c7   :  { %v405_v7 = vadd.f32 %v770_v3, %v404_v4  ;;  %v433_v11 = vmax.f32 %v413_v5, 0.0  ;;  %v439_v37 = vpack.c.bf16 %v428_v32, %v427_v34 }
 0x1c8   :  { %v932_v6 = vpop.f32.mrf.mxu1 }
 0x1c9   :  { %v416_v8 = vadd.f32 %v932_v6, %v770_v3  ;;  %v431_v22 = vmax.f32 %v405_v7, 0.0 }
 0x1ca   :  { %v407_v9 = vpop.f32.mrf.mxu1 }
 0x1cb   :  { %v434_v12 = vmax.f32 %v416_v8, 0.0  ;;  %v408_v13 = vadd.f32 %v770_v3, %v407_v9  ;;  %v796_v9 = vld [vmem:[%s1235_s3 + $0x1] ss:$0 sm:$0xff] }
 0x1cd   :  { %v442_v23 = vpack.c.bf16 %v434_v12, %v433_v11  ;;  %v432_v24 = vmax.f32 %v408_v13, 0.0 }
 0x1cf   :  { %v441_v27 = vpack.c.bf16 %v432_v24, %v431_v22  ;;  %933 = vmatprep.subr.bf16.mxu0 %v442_v23 }
 0x1d0   :  { %934 = vmatpush3.bf16.msra.mxu0 %v442_v23 }
 0x1d1   :  { %935 = vmatprep.subr.bf16.mxu0 %v441_v27 }
 0x1d4   :  { %936 = vmatpush3.bf16.msra.mxu0 %v441_v27 }
 0x1d5   :  { %937 = vmatprep.subr.bf16.mxu0 %v440_v31 }
 0x1d8   :  { %938 = vmatpush3.bf16.msra.mxu0 %v440_v31 }
 0x1d9   :  { %939 = vmatprep.subr.bf16.mxu0 %v439_v37 }
 0x1dc   :  { %940 = vmatpush3.bf16.msra.mxu0 %v439_v37 }
 0x1dd   :  { %941 = vmatprep.subr.bf16.mxu0 %v438_v41 }
 0x1e0   :  { %942 = vmatpush3.bf16.msra.mxu0 %v438_v41 }
 0x1e1   :  { %943 = vmatprep.subr.bf16.mxu0 %v437_v47 }
 0x1e4   :  { %944 = vmatpush3.bf16.msra.mxu0 %v437_v47 }
 0x1e5   :  { %945 = vmatprep.subr.bf16.mxu0 %v436_v50 }
 0x1e8   :  { %946 = vmatpush3.bf16.msra.mxu0 %v436_v50 }
 0x1e9   :  { %947 = vmatprep.subr.bf16.mxu0 %v435_v53 }
 0x1ec   :  { %948 = vmatpush3.bf16.msra.mxu0 %v435_v53 }
 0x1ef   :  { %950 = vmatmul.mubr.bf16.vlgmr.msra.gmra.mxu0 %v1099_v14  ;;  %v1028_v14 = vld [vmem:[%s1234_s2 + $0x40] sm:$0xff]  }
 0x1f0   :  { %953 = vmatprep.mubr.bf16.mxu0 %v1104_v15  ;;  %979 = vmatprep.subr.bf16.mxu1 %v1028_v14 }
 0x1f1   :  { %980 = vmatpush3.bf16.msra.mxu1 %v1028_v14 }
 0x1f7   :  { %954 = vmatmul.mubr.bf16.gmra.mxu0 %v1114_v17 }
 0x1f8   :  { %957 = vmatprep.mubr.bf16.mxu0 %v1119_v18 }
 0x1ff   :  { %958 = vmatmul.mubr.bf16.gmra.mxu0 %v1126_v19 }
 0x200   :  { %961 = vmatprep.mubr.bf16.mxu0 %v1131_v20 }
 0x207   :  { %962 = vmatmul.mubr.bf16.gmra.mxu0 %v1138_v21 }
 0x2af   :  { %v951_v15 = vpop.f32.mrf.mxu0 }
 0x2b1   :  { %v477_v17 = vpop.f32.mrf.mxu0 }
 0x2b3   :  { %v952_v18 = vpop.f32.mrf.mxu0 }
 0x2b4   :  { %v541_v20 = vpack.c.bf16 %v952_v18, %v951_v15 }
 0x2b5   :  { %v480_v19 = vpop.f32.mrf.mxu0 }
 0x2b6   :  { %v540_v55 = vpack.c.bf16 %v480_v19, %v477_v17 }
 0x2b7   :  { %v955_v56 = vpop.f32.mrf.mxu0 }
 0x2b8   :  { %981 = vmatprep.mubr.bf16.mxu1 %v540_v55 }
 0x2b9   :  { %v493_v21 = vpop.f32.mrf.mxu0  ;;  %982 = vmatmul.mubr.bf16.vlgmr.msra.gmra.mxu1 %v541_v20 }
 0x2bb   :  { %v956_v57 = vpop.f32.mrf.mxu0 }
 0x2bc   :  { %v543_v60 = vpack.c.bf16 %v956_v57, %v955_v56 }
 0x2bd   :  { %v496_v58 = vpop.f32.mrf.mxu0 }
 0x2be   :  { %v542_v59 = vpack.c.bf16 %v496_v58, %v493_v21 }
 0x2bf   :  { %v959_v61 = vpop.f32.mrf.mxu0 }
 0x2c0   :  { %985 = vmatprep.mubr.bf16.mxu1 %v542_v59 }
 0x2c1   :  { %v509_v62 = vpop.f32.mrf.mxu0  ;;  %986 = vmatmul.mubr.bf16.gmra.mxu1 %v543_v60 }
 0x2c3   :  { %v960_v63 = vpop.f32.mrf.mxu0 }
 0x2c4   :  { %v545_v2 = vpack.c.bf16 %v960_v63, %v959_v61 }
 0x2c5   :  { %v512_v0 = vpop.f32.mrf.mxu0 }
 0x2c6   :  { %v544_v1 = vpack.c.bf16 %v512_v0, %v509_v62 }
 0x2c7   :  { %v963_v3 = vpop.f32.mrf.mxu0 }
 0x2c8   :  { %989 = vmatprep.mubr.bf16.mxu1 %v544_v1 }
 0x2c9   :  { %v525_v4 = vpop.f32.mrf.mxu0  ;;  %990 = vmatmul.mubr.bf16.gmra.mxu1 %v545_v2 }
 0x2cb   :  { %v964_v5 = vpop.f32.mrf.mxu0 }
 0x2cc   :  { %v547_v8 = vpack.c.bf16 %v964_v5, %v963_v3 }
 0x2cd   :  { %v528_v6 = vpop.f32.mrf.mxu0 }
 0x2ce   :  { %v546_v7 = vpack.c.bf16 %v528_v6, %v525_v4 }
 0x2d0   :  { %993 = vmatprep.mubr.bf16.mxu1 %v546_v7 }
 0x2d1   :  { %994 = vmatmul.mubr.bf16.gmra.mxu1 %v547_v8 }
 0x379   :  { %v983_v10 = vpop.f32.mrf.mxu1 }
 0x37a   :  { %v664_v11 = vadd.f32 %v983_v10, %v796_v9 }
 0x37b   :  { %v655_v12 = vpop.f32.mrf.mxu1 }
 0x37c   :  { %v720_v13 = vmax.f32 %v664_v11, 0.0  ;;  %v656_v16 = vadd.f32 %v796_v9, %v655_v12 }
 0x37d   :  { %v984_v22 = vpop.f32.mrf.mxu1 }
 0x37e   :  { %736 = vst [vmem:[%s1236_s4 + $0x10] sm:$0xff] %v720_v13  ;;  %v718_v23 = vmax.f32 %v656_v16, 0.0  ;;  %v667_v24 = vadd.f32 %v984_v22, %v796_v9 }
 0x37f   :  { %v658_v25 = vpop.f32.mrf.mxu1 }
 0x380   :  { %734 = vst [vmem:[%s1236_s4] sm:$0xff] %v718_v23  ;;  %v721_v26 = vmax.f32 %v667_v24, 0.0  ;;  %v659_v27 = vadd.f32 %v796_v9, %v658_v25 }
 0x381   :  { %v987_v28 = vpop.f32.mrf.mxu1 }
 0x382   :  { %737 = vst [vmem:[%s1236_s4 + $0x18] sm:$0xff] %v721_v26  ;;  %v719_v29 = vmax.f32 %v659_v27, 0.0  ;;  %v680_v30 = vadd.f32 %v987_v28, %v796_v9 }
 0x383   :  { %v671_v31 = vpop.f32.mrf.mxu1 }
 0x384   :  { %735 = vst [vmem:[%s1236_s4 + $0x8] sm:$0xff] %v719_v29  ;;  %v724_v32 = vmax.f32 %v680_v30, 0.0  ;;  %v672_v33 = vadd.f32 %v796_v9, %v671_v31 }
 0x385   :  { %v988_v34 = vpop.f32.mrf.mxu1 }
 0x386   :  { %740 = vst [vmem:[%s1236_s4 + $0x30] sm:$0xff] %v724_v32  ;;  %v722_v35 = vmax.f32 %v672_v33, 0.0  ;;  %v683_v36 = vadd.f32 %v988_v34, %v796_v9 }
 0x387   :  { %v674_v37 = vpop.f32.mrf.mxu1 }
 0x388   :  { %738 = vst [vmem:[%s1236_s4 + $0x20] sm:$0xff] %v722_v35  ;;  %v725_v38 = vmax.f32 %v683_v36, 0.0  ;;  %v675_v39 = vadd.f32 %v796_v9, %v674_v37 }
 0x389   :  { %v991_v40 = vpop.f32.mrf.mxu1 }
 0x38a   :  { %741 = vst [vmem:[%s1236_s4 + $0x38] sm:$0xff] %v725_v38  ;;  %v723_v41 = vmax.f32 %v675_v39, 0.0  ;;  %v696_v42 = vadd.f32 %v991_v40, %v796_v9 }
 0x38b   :  { %v687_v43 = vpop.f32.mrf.mxu1 }
 0x38c   :  { %739 = vst [vmem:[%s1236_s4 + $0x28] sm:$0xff] %v723_v41  ;;  %v728_v44 = vmax.f32 %v696_v42, 0.0  ;;  %v688_v45 = vadd.f32 %v796_v9, %v687_v43 }
 0x38d   :  { %v992_v46 = vpop.f32.mrf.mxu1 }
 0x38e   :  { %744 = vst [vmem:[%s1236_s4 + $0x50] sm:$0xff] %v728_v44  ;;  %v726_v47 = vmax.f32 %v688_v45, 0.0  ;;  %v699_v48 = vadd.f32 %v992_v46, %v796_v9 }
 0x38f   :  { %v690_v49 = vpop.f32.mrf.mxu1 }
 0x390   :  { %742 = vst [vmem:[%s1236_s4 + $0x40] sm:$0xff] %v726_v47  ;;  %v729_v50 = vmax.f32 %v699_v48, 0.0  ;;  %v691_v51 = vadd.f32 %v796_v9, %v690_v49 }
 0x391   :  { %v995_v52 = vpop.f32.mrf.mxu1 }
 0x392   :  { %745 = vst [vmem:[%s1236_s4 + $0x58] sm:$0xff] %v729_v50  ;;  %v727_v53 = vmax.f32 %v691_v51, 0.0  ;;  %v712_v54 = vadd.f32 %v995_v52, %v796_v9 }
 0x393   :  { %v703_v14 = vpop.f32.mrf.mxu1 }
 0x394   :  { %743 = vst [vmem:[%s1236_s4 + $0x48] sm:$0xff] %v727_v53  ;;  %v732_v15 = vmax.f32 %v712_v54, 0.0  ;;  %v704_v17 = vadd.f32 %v796_v9, %v703_v14 }
 0x395   :  { %v996_v18 = vpop.f32.mrf.mxu1 }
 0x396   :  { %748 = vst [vmem:[%s1236_s4 + $0x70] sm:$0xff] %v732_v15  ;;  %v730_v19 = vmax.f32 %v704_v17, 0.0  ;;  %v715_v55 = vadd.f32 %v996_v18, %v796_v9 }
 0x397   :  { %v706_v20 = vpop.f32.mrf.mxu1 }
 0x398   :  { %746 = vst [vmem:[%s1236_s4 + $0x60] sm:$0xff] %v730_v19  ;;  %v733_v56 = vmax.f32 %v715_v55, 0.0  ;;  %v707_v21 = vadd.f32 %v796_v9, %v706_v20 }
 0x39a   :  { %749 = vst [vmem:[%s1236_s4 + $0x78] sm:$0xff] %v733_v56  ;;  %v731_v57 = vmax.f32 %v707_v21, 0.0 }
 0x39c   :  { %747 = vst [vmem:[%s1236_s4 + $0x68] sm:$0xff] %v731_v57 }

</bundles_post_ra>
